<compile_context>
chip_gen: v6e
topology: v6e:2x2x1
jax: 0.10.0
libtpu: 0.0.40
codegen_flags: <defaults>
</compile_context>

<pallas_src>
import functools

import jax
import jax.numpy as jnp
from jax.experimental import pallas as pl
from jax.experimental.pallas import tpu as pltpu

_SQRT_2_OVER_PI = 0.7978845608028654


def _gelu_new(x):
    # ALBERT "gelu_new" (tanh approximation), computed in f32.
    x = x.astype(jnp.float32)
    return 0.5 * x * (1.0 + jnp.tanh(_SQRT_2_OVER_PI * (x + 0.044715 * x * x * x)))


def _round_up(x, m):
    return ((x + m - 1) // m) * m


def _mxu_dot(lhs, rhs):
    # If dtypes differ (e.g. f32 activations with bf16 weights), feed the MXU
    # in the narrower dtype and accumulate in f32.
    if lhs.dtype != rhs.dtype:
        narrow = (rhs.dtype
                  if jnp.dtype(rhs.dtype).itemsize < jnp.dtype(lhs.dtype).itemsize
                  else lhs.dtype)
        lhs = lhs.astype(narrow)
        rhs = rhs.astype(narrow)
    return jnp.dot(lhs, rhs, preferred_element_type=jnp.float32)


# ------------------ Stage 1: dense -> gelu_new -> LayerNorm -----------------

def _dense_ln_kernel(h_ref, w1_ref, b1_ref, gamma_ref, beta_ref, x_ref, *, ln_eps):
    x = _mxu_dot(h_ref[...], w1_ref[...]) + b1_ref[...]
    x = _gelu_new(x)
    mean = jnp.mean(x, axis=-1, keepdims=True)
    var = jnp.mean(jnp.square(x - mean), axis=-1, keepdims=True)
    x = (x - mean) * jax.lax.rsqrt(var + ln_eps)
    x_ref[...] = (x * gamma_ref[...] + beta_ref[...]).astype(x_ref.dtype)


# ------------------ Stage 2: decoder matmul + folded (2x) bias --------------

def _decoder_kernel(x_ref, w2_ref, bias2_ref, out_ref):
    scores = _mxu_dot(x_ref[...], w2_ref[...])          # [tm, E] @ [E, tn] -> f32
    out_ref[...] = (scores + bias2_ref[...]).astype(out_ref.dtype)


def _vmem_limit(vmem_est):
    # Generation-aware VMEM limit: ~80% of physical capacity as headroom for
    # compiler-internal scratch (v7x: ~51 MiB of 64; v5e/v6e: ~102 MiB of 128).
    try:
        cap = int(getattr(pltpu.get_tpu_info(), "vmem_capacity_bytes",
                          64 * 1024 * 1024))
    except Exception:  # pragma: no cover - conservative fallback
        cap = 64 * 1024 * 1024
    ceiling = int(0.8 * cap)
    return int(min(max(2 * vmem_est, 32 * 1024 * 1024), ceiling))


def albert_mlm_head(hidden_states, params, *, ln_eps=1e-5, tm=256, tn=4096,
                    cast_weights_to_bf16=True, out_dtype=None):
    """hidden_states: [B, S, hidden_size] -> prediction_scores: [B, S, vocab_size].

    NOTE: ln_eps defaults to 1e-5 (PyTorch nn.LayerNorm default, which is what
    the original module uses).  Pass ln_eps=1e-12 if matching a HuggingFace
    ALBERT config that overrides layer_norm_eps.
    """
    B, S, H = hidden_states.shape
    w1 = params["dense_w"]       # [H, E]   (transpose of PyTorch nn.Linear weight)
    b1 = params["dense_b"]       # [E]
    gamma = params["ln_gamma"]   # [E]
    beta = params["ln_beta"]     # [E]
    w2 = params["decoder_w"]     # [E, V]
    bias = params["bias"]        # [V]
    E = w1.shape[1]
    V = w2.shape[1]
    if out_dtype is None:
        out_dtype = hidden_states.dtype

    N = B * S
    h2d = hidden_states.reshape(N, H)

    # --- token-axis tiling (sublane rows) ---
    if N > tm:
        assert tm % 8 == 0, "tm must be a multiple of 8 when tiling the token axis"
        tm_eff = tm
        n_pad = _round_up(N, tm_eff)
    else:
        tm_eff = N          # single full-extent block (exempt from the 8-div rule)
        n_pad = N
    if n_pad != N:
        h2d = jnp.pad(h2d, ((0, n_pad - N), (0, 0)))

    # --- vocab-axis tiling (lanes) ---
    if V > tn:
        assert tn % 128 == 0, "tn must be a multiple of 128 when tiling the vocab axis"
        tn_eff = tn
        v_pad = _round_up(V, tn_eff)
    else:
        tn_eff = V
        v_pad = V
    bias2 = 2.0 * bias          # fold the double bias add into one vector
    if v_pad != V:
        w2 = jnp.pad(w2, ((0, 0), (0, v_pad - V)))
        bias2 = jnp.pad(bias2, (0, v_pad - V))

    if cast_weights_to_bf16:
        # HBM-bound op: halve W1/W2 traffic and run the MXU at native bf16 rate.
        w1 = w1.astype(jnp.bfloat16)
        w2 = w2.astype(jnp.bfloat16)
        x_dtype = jnp.bfloat16        # intermediate LN(gelu(dense)) activations
    else:
        x_dtype = jnp.float32

    b1_r = b1.reshape(1, E).astype(jnp.float32)
    gamma_r = gamma.reshape(1, E).astype(jnp.float32)
    beta_r = beta.reshape(1, E).astype(jnp.float32)
    bias2_r = bias2.reshape(1, v_pad).astype(jnp.float32)

    in_bytes = jnp.dtype(hidden_states.dtype).itemsize
    w1_bytes = jnp.dtype(w1.dtype).itemsize
    w2_bytes = jnp.dtype(w2.dtype).itemsize
    x_bytes = jnp.dtype(x_dtype).itemsize
    out_bytes = jnp.dtype(out_dtype).itemsize

    # ------------------------------------------------------------------ stage 1
    grid1 = (n_pad // tm_eff,)
    cost1 = pl.CostEstimate(
        flops=2 * n_pad * H * E,
        transcendentals=n_pad * E,
        bytes_accessed=(n_pad * H * in_bytes + H * E * w1_bytes + 3 * E * 4
                        + n_pad * E * x_bytes),
    )
    vmem_est1 = 2 * (tm_eff * H * in_bytes + H * E * w1_bytes + 3 * E * 4
                     + tm_eff * E * x_bytes)

    x2d = pl.pallas_call(
        functools.partial(_dense_ln_kernel, ln_eps=ln_eps),
        out_shape=jax.ShapeDtypeStruct((n_pad, E), x_dtype),
        grid_spec=pltpu.PrefetchScalarGridSpec(
            num_scalar_prefetch=0,
            grid=grid1,
            in_specs=[
                pl.BlockSpec((tm_eff, H), lambda i: (i, 0)),   # token tile
                pl.BlockSpec((H, E), lambda i: (0, 0)),        # dense weight (resident)
                pl.BlockSpec((1, E), lambda i: (0, 0)),        # dense bias
                pl.BlockSpec((1, E), lambda i: (0, 0)),        # LN gamma
                pl.BlockSpec((1, E), lambda i: (0, 0)),        # LN beta
            ],
            out_specs=pl.BlockSpec((tm_eff, E), lambda i: (i, 0)),
        ),
        compiler_params=pltpu.CompilerParams(
            dimension_semantics=("parallel",),
            vmem_limit_bytes=_vmem_limit(vmem_est1)),
        cost_estimate=cost1,
    )(h2d, w1, b1_r, gamma_r, beta_r)

    # ------------------------------------------------------------------ stage 2
    # Vocab-outer / token-inner grid: the W2 tile (E, tn) is fetched once per
    # vocab tile (W2 read from HBM exactly once overall); only the tiny
    # x[N, E] stream is re-read V/tn times.  Both axes are fully parallel.
    grid2 = (v_pad // tn_eff, n_pad // tm_eff)
    cost2 = pl.CostEstimate(
        flops=2 * n_pad * E * v_pad,
        transcendentals=0,
        bytes_accessed=(grid2[0] * n_pad * E * x_bytes     # x re-read per vocab tile
                        + E * v_pad * w2_bytes             # W2 read once
                        + v_pad * 4
                        + n_pad * v_pad * out_bytes),      # dominant output write
    )
    vmem_est2 = 2 * (tm_eff * E * x_bytes + E * tn_eff * w2_bytes
                     + tn_eff * 4 + tm_eff * tn_eff * out_bytes)

    out = pl.pallas_call(
        _decoder_kernel,
        out_shape=jax.ShapeDtypeStruct((n_pad, v_pad), out_dtype),
        grid_spec=pltpu.PrefetchScalarGridSpec(
            num_scalar_prefetch=0,
            grid=grid2,
            in_specs=[
                pl.BlockSpec((tm_eff, E), lambda j, i: (i, 0)),     # x tile (const in j)
                pl.BlockSpec((E, tn_eff), lambda j, i: (0, j)),     # W2 tile (const in i)
                pl.BlockSpec((1, tn_eff), lambda j, i: (0, j)),     # folded (2x) bias tile
            ],
            out_specs=pl.BlockSpec((tm_eff, tn_eff), lambda j, i: (i, j)),
        ),
        compiler_params=pltpu.CompilerParams(
            dimension_semantics=("parallel", "parallel"),
            vmem_limit_bytes=_vmem_limit(vmem_est2)),
        cost_estimate=cost2,
    )(x2d, w2, bias2_r)

    return out[:N, :V].reshape(B, S, V)


# --------------------------------- reference ---------------------------------

def _reference(hidden_states, params, ln_eps=1e-5):
    x = hidden_states @ params["dense_w"] + params["dense_b"]
    x = _gelu_new(x)
    mean = jnp.mean(x, axis=-1, keepdims=True)
    var = jnp.mean(jnp.square(x - mean), axis=-1, keepdims=True)
    x = (x - mean) / jnp.sqrt(var + ln_eps)
    x = x * params["ln_gamma"] + params["ln_beta"]
    s = x @ params["decoder_w"] + params["bias"]
    return s + params["bias"]   # NOTE: tied decoder.bias + explicit add => bias twice


def _make_params(key, H, E, V):
    k_w1, k_b1, k_g, k_bt, k_w2, k_bias = jax.random.split(key, 6)
    return {
        # stored as [in, out] (transpose of PyTorch nn.Linear weight [out, in])
        "dense_w": 0.02 * jax.random.normal(k_w1, (H, E), jnp.float32),
        "dense_b": 0.01 * jax.random.normal(k_b1, (E,), jnp.float32),
        "ln_gamma": 1.0 + 0.01 * jax.random.normal(k_g, (E,), jnp.float32),
        "ln_beta": 0.01 * jax.random.normal(k_bt, (E,), jnp.float32),
        "decoder_w": 0.02 * jax.random.normal(k_w2, (E, V), jnp.float32),
        "bias": 0.01 * jax.random.normal(k_bias, (V,), jnp.float32),
    }


if __name__ == "__main__":
    key = jax.random.PRNGKey(0)
    k1, k2, k3, k4 = jax.random.split(key, 4)

    # --- Test 1: small config, single-tile grid, f32 path (tight tolerance) ---
    B, S, H, E, V = 2, 8, 32, 16, 64
    params = _make_params(k1, H, E, V)
    hidden_states = jax.random.normal(k2, (B, S, H), jnp.float32)

    out = albert_mlm_head(hidden_states, params, cast_weights_to_bf16=False)
    out = jax.block_until_ready(out)
    ref = _reference(hidden_states, params)
    assert out.shape == (B, S, V)
    assert jnp.allclose(out, ref, atol=1e-4, rtol=1e-4), "test1 mismatch vs reference"

    # --- Test 2: multi-tile grid + row/vocab padding, f32 path ---------------
    B2, S2, H2, E2, V2 = 5, 4, 32, 16, 200     # N=20 -> padded to 24; V=200 -> padded to 256
    params2 = _make_params(k3, H2, E2, V2)
    hidden_states2 = jax.random.normal(k4, (B2, S2, H2), jnp.float32)

    out2 = albert_mlm_head(hidden_states2, params2, tm=8, tn=128,
                           cast_weights_to_bf16=False)
    out2 = jax.block_until_ready(out2)
    ref2 = _reference(hidden_states2, params2)
    assert out2.shape == (B2, S2, V2)
    assert jnp.allclose(out2, ref2, atol=1e-4, rtol=1e-4), "test2 mismatch vs reference"

    # --- Test 3: default fast path (bf16 weights / intermediates, bf16 out) ---
    out3 = albert_mlm_head(hidden_states2, params2, tm=8, tn=128,
                           out_dtype=jnp.bfloat16)   # cast_weights_to_bf16=True default
    out3 = jax.block_until_ready(out3)
    assert out3.dtype == jnp.bfloat16
    assert jnp.allclose(out3.astype(jnp.float32), ref2, atol=3e-2, rtol=3e-2), \
        "test3 (bf16 path) mismatch vs reference"

    print("KERNEL_OK")
</pallas_src>

<mosaic_0001>
module attributes {stable_mosaic.version = 11 : i64} {
  func.func @_dense_ln_kernel(%arg0: i32, %arg1: memref<16x32xf32, #tpu.memory_space<vmem>>, %arg2: memref<32x16xf32, #tpu.memory_space<vmem>>, %arg3: memref<1x16xf32, #tpu.memory_space<vmem>>, %arg4: memref<1x16xf32, #tpu.memory_space<vmem>>, %arg5: memref<1x16xf32, #tpu.memory_space<vmem>>, %arg6: memref<16x16xf32, #tpu.memory_space<vmem>>) attributes {dimension_semantics = [#tpu.dimension_semantics<parallel>], iteration_bounds = array<i64: 1>, scalar_prefetch = 0 : i64, scratch_operands = 0 : i64, tpu.core_type = #tpu.core_type<tc>, window_params = [{transform_indices = @transform_0, window_bounds = array<i64: 16, 32>}, {pipeline_mode = #tpu.pipeline_mode<synchronous>, transform_indices = @transform_1, window_bounds = array<i64: 32, 16>}, {pipeline_mode = #tpu.pipeline_mode<synchronous>, transform_indices = @transform_2, window_bounds = array<i64: 1, 16>}, {pipeline_mode = #tpu.pipeline_mode<synchronous>, transform_indices = @transform_3, window_bounds = array<i64: 1, 16>}, {pipeline_mode = #tpu.pipeline_mode<synchronous>, transform_indices = @transform_4, window_bounds = array<i64: 1, 16>}, {transform_indices = @transform_5, window_bounds = array<i64: 16, 16>}]} {
    %c0 = arith.constant 0 : index
    %c0_0 = arith.constant 0 : index
    %0 = vector.load %arg1[%c0, %c0_0] : memref<16x32xf32, #tpu.memory_space<vmem>>, vector<16x32xf32>
    %c0_1 = arith.constant 0 : index
    %c0_2 = arith.constant 0 : index
    %1 = vector.load %arg2[%c0_1, %c0_2] : memref<32x16xf32, #tpu.memory_space<vmem>>, vector<32x16xf32>
    %cst = arith.constant dense<0.000000e+00> : vector<16x16xf32>
    %2 = tpu.matmul %0, %1, %cst {dimension_numbers = #tpu.dot_dimension_numbers<[1], [0], [0], [1], [0, 0, 1, 1], [], []>} : vector<16x32xf32>, vector<32x16xf32>, vector<16x16xf32> -> vector<16x16xf32>
    %c0_3 = arith.constant 0 : index
    %c0_4 = arith.constant 0 : index
    %3 = vector.load %arg3[%c0_3, %c0_4] : memref<1x16xf32, #tpu.memory_space<vmem>>, vector<1x16xf32>
    %4 = vector.broadcast %3 : vector<1x16xf32> to vector<16x16xf32>
    %5 = arith.addf %2, %4 : vector<16x16xf32>
    %cst_5 = arith.constant 5.000000e-01 : f32
    %6 = vector.broadcast %cst_5 : f32 to vector<16x16xf32>
    %7 = arith.mulf %6, %5 : vector<16x16xf32>
    %cst_6 = arith.constant 4.471500e-02 : f32
    %8 = vector.broadcast %cst_6 : f32 to vector<16x16xf32>
    %9 = arith.mulf %8, %5 : vector<16x16xf32>
    %10 = arith.mulf %9, %5 : vector<16x16xf32>
    %11 = arith.mulf %10, %5 : vector<16x16xf32>
    %12 = arith.addf %5, %11 : vector<16x16xf32>
    %cst_7 = arith.constant 0.797884583 : f32
    %13 = vector.broadcast %cst_7 : f32 to vector<16x16xf32>
    %14 = arith.mulf %13, %12 : vector<16x16xf32>
    %15 = math.tanh %14 : vector<16x16xf32>
    %cst_8 = arith.constant 1.000000e+00 : f32
    %16 = vector.broadcast %cst_8 : f32 to vector<16x16xf32>
    %17 = arith.addf %16, %15 : vector<16x16xf32>
    %18 = arith.mulf %7, %17 : vector<16x16xf32>
    %cst_9 = arith.constant dense<0.000000e+00> : vector<16xf32>
    %19 = vector.multi_reduction <add>, %18, %cst_9 [1] : vector<16x16xf32> to vector<16xf32>
    %20 = vector.shape_cast %19 : vector<16xf32> to vector<16x1xf32>
    %cst_10 = arith.constant 1.600000e+01 : f32
    %21 = vector.broadcast %cst_10 : f32 to vector<16x1xf32>
    %22 = arith.divf %20, %21 : vector<16x1xf32>
    %23 = vector.broadcast %22 : vector<16x1xf32> to vector<16x16xf32>
    %24 = arith.subf %18, %23 : vector<16x16xf32>
    %25 = arith.mulf %24, %24 : vector<16x16xf32>
    %cst_11 = arith.constant dense<0.000000e+00> : vector<16xf32>
    %26 = vector.multi_reduction <add>, %25, %cst_11 [1] : vector<16x16xf32> to vector<16xf32>
    %27 = vector.shape_cast %26 : vector<16xf32> to vector<16x1xf32>
    %cst_12 = arith.constant 1.600000e+01 : f32
    %28 = vector.broadcast %cst_12 : f32 to vector<16x1xf32>
    %29 = arith.divf %27, %28 : vector<16x1xf32>
    %30 = vector.broadcast %22 : vector<16x1xf32> to vector<16x16xf32>
    %31 = arith.subf %18, %30 : vector<16x16xf32>
    %cst_13 = arith.constant 9.99999974E-6 : f32
    %32 = vector.broadcast %cst_13 : f32 to vector<16x1xf32>
    %33 = arith.addf %29, %32 : vector<16x1xf32>
    %34 = math.rsqrt %33 : vector<16x1xf32>
    %35 = vector.broadcast %34 : vector<16x1xf32> to vector<16x16xf32>
    %36 = arith.mulf %31, %35 : vector<16x16xf32>
    %c0_14 = arith.constant 0 : index
    %c0_15 = arith.constant 0 : index
    %37 = vector.load %arg4[%c0_14, %c0_15] : memref<1x16xf32, #tpu.memory_space<vmem>>, vector<1x16xf32>
    %38 = vector.broadcast %37 : vector<1x16xf32> to vector<16x16xf32>
    %39 = arith.mulf %36, %38 : vector<16x16xf32>
    %c0_16 = arith.constant 0 : index
    %c0_17 = arith.constant 0 : index
    %40 = vector.load %arg5[%c0_16, %c0_17] : memref<1x16xf32, #tpu.memory_space<vmem>>, vector<1x16xf32>
    %41 = vector.broadcast %40 : vector<1x16xf32> to vector<16x16xf32>
    %42 = arith.addf %39, %41 : vector<16x16xf32>
    %c0_18 = arith.constant 0 : index
    %c0_19 = arith.constant 0 : index
    %43 = vector.load %arg6[%c0_18, %c0_19] : memref<16x16xf32, #tpu.memory_space<vmem>>, vector<16x16xf32>
    tpu.vector_store %arg6[%c0_18, %c0_19], %42 {strides = array<i32>} : memref<16x16xf32, #tpu.memory_space<vmem>>, vector<16x16xf32>,
    return
  }
  func.func @transform_0(%arg0: i32) -> (i32, i32) {
    %c0_i32 = arith.constant 0 : i32
    %c0_i32_0 = arith.constant 0 : i32
    return %arg0, %c0_i32 : i32, i32
  }
  func.func @transform_1(%arg0: i32) -> (i32, i32) {
    %c0_i32 = arith.constant 0 : i32
    %c0_i32_0 = arith.constant 0 : i32
    %c0_i32_1 = arith.constant 0 : i32
    return %c0_i32, %c0_i32_0 : i32, i32
  }
  func.func @transform_2(%arg0: i32) -> (i32, i32) {
    %c0_i32 = arith.constant 0 : i32
    %c0_i32_0 = arith.constant 0 : i32
    %c0_i32_1 = arith.constant 0 : i32
    return %c0_i32, %c0_i32_0 : i32, i32
  }
  func.func @transform_3(%arg0: i32) -> (i32, i32) {
    %c0_i32 = arith.constant 0 : i32
    %c0_i32_0 = arith.constant 0 : i32
    %c0_i32_1 = arith.constant 0 : i32
    return %c0_i32, %c0_i32_0 : i32, i32
  }
  func.func @transform_4(%arg0: i32) -> (i32, i32) {
    %c0_i32 = arith.constant 0 : i32
    %c0_i32_0 = arith.constant 0 : i32
    %c0_i32_1 = arith.constant 0 : i32
    return %c0_i32, %c0_i32_0 : i32, i32
  }
  func.func @transform_5(%arg0: i32) -> (i32, i32) {
    %c0_i32 = arith.constant 0 : i32
    %c0_i32_0 = arith.constant 0 : i32
    return %arg0, %c0_i32 : i32, i32
  }
}

</mosaic_0001>

<bundles_post_ra>
// kernel: tpu_custom_call.1
= control target key start
LH: loop header
LB: loop body
LE: loop exit
PB: predicated region body
PF: predicated region fallthrough
CT: control target
= control target key end

     0   :  { %vm34_vm0 = vcmask 261120   ;;  %s322_s0 = inlined_call_operand.vmem [shape: f32[16,32], index: 0, kind: input, shape index: {}]   ;;  %s323_s1 = inlined_call_operand.vmem [shape: f32[32,16], index: 1, kind: input, shape index: {}]   ;;  %s324_s2 = inlined_call_operand.vmem [shape: f32[1,16], index: 2, kind: input, shape index: {}]   ;;  %s325_s3 = inlined_call_operand.vmem [shape: f32[1,16], index: 3, kind: input, shape index: {}]   ;;  %s326_s4 = inlined_call_operand.vmem [shape: f32[1,16], index: 4, kind: input, shape index: {}]   ;;  %s327_s5 = inlined_call_operand.hbm [shape: f32[16,16], index: 5, kind: output, shape index: {}]  }
   0x1   :  { %v26_v0 = vld [vmem:[%s323_s1 + $0x18] sm:$0xff]  ;;  %v25_v1 = vld [vmem:[%s323_s1 + $0x10] sm:$0xff]  ;;  %v21_v2 = vld [vmem:[%s322_s0] sm:$0xff] }
   0x2   :  { %209 = vmatprep.subr.mxu0 %v26_v0  ;;  %v24_v3 = vld [vmem:[%s323_s1 + $0x8] sm:$0xff]  ;;  %217 = vmatprep.mubr.msk.f32.mxu0 %vm34_vm0, %v21_v2 }
   0x3   :  { %210 = vmatpush3.msra.mxu0 %v26_v0 }
   0x4   :  { %10 = vsyncpa [#allocation3], 0  ;;  %211 = vmatprep.subr.mxu0 %v25_v1  ;;  %v23_v4 = vld [vmem:[%s323_s1] sm:$0xff]  ;;  %v22_v5 = vld [vmem:[%s322_s0 + $0x8] sm:$0xff]  ;;  %vm134_vm1 = vcmask 130048   ;;  %s253_s8 = smov [#allocation2]  }
   0x5   :  { %212 = vmatpush3.msra.mxu0 %v25_v1  ;;  %v198_v6 = vld [vmem:[%s324_s2] ss:$0 sm:$0xff]  ;;  %s187_s9 = sshll.u32 %s253_s8, 4  ;;  %s188_s9 = int_to_ptr.vmem [resolvable:$true] %s187_s9 }
   0x6   :  { %213 = vmatprep.subr.mxu0 %v24_v3  ;;  %v201_v48 = vld [vmem:[%s325_s3] ss:$0 sm:$0xff]  ;;  %s231_s10 = scalar_lea.vmem %s188_s9, 256  ;;  %p236_p1 = scmp.lt.s32.totalorder %s188_s9, %s188_s9 }
   0x7   :  { %214 = vmatpush3.msra.mxu0 %v24_v3  ;;  %v202_v50 = vld [vmem:[%s326_s4] ss:$0 sm:$0xff]  ;;  %p232_p0 = scmp.ne.s32.totalorder %s188_s9, %s231_s10  ;;  %p237_p2 = scmp.lt.s32.totalorder %s231_s10, %s231_s10 }
   0x8   :  { %215 = vmatprep.subr.mxu0 %v23_v4 }
   0x9   :  { %216 = vmatpush3.msra.mxu0 %v23_v4  ;;  %p238_p3 = por %p237_p2, %p236_p1 }
   0xa   :  { %218 = vmatmul.mubr.msk.f32.vlgmr.msra.gmra.mxu0 %vm34_vm0, %v22_v5 }
   0xb   :  { %p239_p4 = pnand %p238_p3, %p232_p0 }
  0xca   :  { %v219_v7 = vpop.f32.mrf.mxu0 }
  0xcb   :  { %v113_v8 = vadd.f32 %v219_v7, %v198_v6 }
  0xcc   :  { %v107_v9 = vpop.f32.mrf.mxu0 }
  0xcd   :  { %v119_v10 = vmul.f32 0.044715, %v113_v8  ;;  %v108_v11 = vadd.f32 %v198_v6, %v107_v9  ;;  %v117_v27 = vmul.f32 0.5, %v113_v8 }
  0xcf   :  { %v118_v12 = vmul.f32 0.044715, %v108_v11  ;;  %v121_v13 = vmul.f32 %v119_v10, %v113_v8  ;;  %v116_v23 = vmul.f32 0.5, %v108_v11 }
  0xd1   :  { %v120_v14 = vmul.f32 %v118_v12, %v108_v11  ;;  %v123_v15 = vmul.f32 %v121_v13, %v113_v8 }
  0xd3   :  { %v122_v16 = vmul.f32 %v120_v14, %v108_v11  ;;  %v125_v17 = vadd.f32 %v123_v15, %v113_v8 }
  0xd5   :  { %v124_v18 = vadd.f32 %v122_v16, %v108_v11  ;;  %v127_v19 = vmul.f32 0.7978846, %v125_v17 }
  0xd7   :  { %v126_v20 = vmul.f32 0.7978846, %v124_v18  ;;  %223 = vtanh.f32 %v127_v19 }
  0xd9   :  { %225 = vtanh.f32 %v126_v20 }
  0xe4   :  { %v224_v21 = vpop.eup %223 }
  0xe5   :  { %v131_v25 = vadd.f32 1.0, %v224_v21 }
  0xe6   :  { %v226_v22 = vpop.eup %225 }
  0xe7   :  { %v130_v24 = vadd.f32 1.0, %v226_v22  ;;  %v133_v29 = vmul.f32 %v131_v25, %v117_v27 }
  0xe9   :  { %v132_v26 = vmul.f32 %v130_v24, %v116_v23  ;;  %v138_v30 = vsel %vm134_vm1, %v133_v29, 0.0 }
  0xeb   :  { %v135_v28 = vsel %vm134_vm1, %v132_v26, 0.0 }
  0xec   :  { %136 = vadd.xlane.f32.xlu0 %v135_v28 }
  0xf0   :  { %139 = vadd.xlane.f32.xlu0 %v138_v30 }
 0x175   :  { %v137_v31 = vpop.xlane.xlu0 %136 }
 0x176   :  { %v142_v32 = vmul.f32 0.0625, %v137_v31 }
 0x178   :  { %v144_v33 = vsub.f32 %v132_v26, %v142_v32 }
 0x179   :  { %v140_v34 = vpop.xlane.xlu0 %139 }
 0x17a   :  { %v143_v35 = vmul.f32 0.0625, %v140_v34  ;;  %v146_v36 = vmul.f32 %v144_v33, %v144_v33 }
 0x17c   :  { %v145_v37 = vsub.f32 %v133_v29, %v143_v35  ;;  %v148_v38 = vsel %vm134_vm1, %v146_v36, 0.0 }
 0x17d   :  { %149 = vadd.xlane.f32.xlu1 %v148_v38 }
 0x17e   :  { %v147_v39 = vmul.f32 %v145_v37, %v145_v37 }
 0x180   :  { %v151_v40 = vsel %vm134_vm1, %v147_v39, 0.0 }
 0x181   :  { %152 = vadd.xlane.f32.xlu1 %v151_v40 }
 0x206   :  { %v150_v41 = vpop.xlane.xlu1 %149 }
 0x207   :  { %v154_v42 = vmul.f32 0.0625, %v150_v41 }
 0x209   :  { %v156_v43 = vadd.f32 1e-05, %v154_v42 }
 0x20a   :  { %v153_v44 = vpop.xlane.xlu1 %152 }
 0x20b   :  { %227 = vrsqrt.f32 %v156_v43  ;;  %v155_v45 = vmul.f32 0.0625, %v153_v44 }
 0x20d   :  { %v157_v46 = vadd.f32 1e-05, %v155_v45 }
 0x20f   :  { %229 = vrsqrt.f32 %v157_v46 }
 0x218   :  { %v228_v47 = vpop.eup %227 }
 0x219   :  { %v160_v49 = vmul.f32 %v228_v47, %v144_v33 }
 0x21b   :  { %v169_v51 = vmul.f32 %v201_v48, %v160_v49 }
 0x21c   :  { %v230_v52 = vpop.eup %229 }
 0x21d   :  { %v161_v53 = vmul.f32 %v230_v52, %v145_v37  ;;  %v178_v54 = vadd.f32 %v202_v50, %v169_v51 }
 0x21f   :  { %v170_v55 = vmul.f32 %v201_v48, %v161_v53  ;;  %180 = vst.msk [vmem:[#allocation2] sm:$0xff] %vm134_vm1, %v178_v54 }
 0x221   :  { %v179_v56 = vadd.f32 %v202_v50, %v170_v55 }
 0x223   :  { %181 = vst.msk [vmem:[#allocation2 + $0x8] sm:$0xff] %vm134_vm1, %v179_v56 }
 0x224   :  { %242 = shalt.err (!%p239_p4)
}
 0x225   :  { %s254_s3 = smov 128   ;;  %s255_s4 = smov 8  }
 0x226   :  { %193 = dma.vmem_to_hbm [thread:$0]  %s188_s9, 256, %s327_s5, [#allocation3], %s254_s3, %s254_s3, %s255_s4  }
 0x227   :  { %251 = dma.done.wait [#allocation3], 256  }
 0x228   :  { %252 = vsyncadd [#allocation3], 4294967040 }
 0x229   :  { %197 = vsyncpa [#allocation3], 1 }

</bundles_post_ra>
